<compile_context>
chip_gen: v6e
topology: v6e:2x2x1
jax: 0.10.0
libtpu: 0.0.40
codegen_flags: <defaults>
</compile_context>

<pallas_src>
import math
from functools import partial

import jax
import jax.numpy as jnp
from jax.experimental import pallas as pl
from jax.experimental.pallas import tpu as pltpu

_LANE = 128
_DEFAULT_BLOCK_BUDGET = 1 << 20   # f32 elems per plane per block (~4 MiB)
_VMEM_LIMIT_BYTES = 48 << 20      # 4 blocked planes x 2 buffers x 4 MiB ~= 32 MiB live


def _make_kernel(per_batch_scale: bool, complex_scale: bool):
    """Kernel body specialised on the (static) structure of the ScaleBlock factor."""

    def kernel(*refs):
        if per_batch_scale and complex_scale:
            g_ref, scr_ref, sci_ref, sr_ref, si_ref, or_ref, oi_ref = refs
        elif per_batch_scale:
            g_ref, scr_ref, sr_ref, si_ref, or_ref, oi_ref = refs
            sci_ref = None
        else:
            g_ref, sr_ref, si_ref, or_ref, oi_ref = refs
            scr_ref = sci_ref = None

        # 2x2 gate as SMEM scalars: [mr00, mr01, mr10, mr11, mi00, mi01, mi10, mi11]
        mr00 = g_ref[0]; mr01 = g_ref[1]; mr10 = g_ref[2]; mr11 = g_ref[3]
        mi00 = g_ref[4]; mi01 = g_ref[5]; mi10 = g_ref[6]; mi11 = g_ref[7]

        if per_batch_scale:
            scr = scr_ref[...]                         # (1, lane), real part of scale
            sci = sci_ref[...] if complex_scale else None

        # Target-qubit rows of the state block, each (BP, 1, BT, lane).
        s0r = sr_ref[:, 0:1, :, :]; s1r = sr_ref[:, 1:2, :, :]
        s0i = si_ref[:, 0:1, :, :]; s1i = si_ref[:, 1:2, :, :]

        # Row 0 of the complex 2x2 matvec (VPU only, no MXU); scale, store, then
        # row 1 (interleaved stores keep fewer full-block temporaries live).
        o0r = mr00 * s0r - mi00 * s0i + mr01 * s1r - mi01 * s1i
        o0i = mr00 * s0i + mi00 * s0r + mr01 * s1i + mi01 * s1r
        if per_batch_scale:
            if complex_scale:
                o0r, o0i = scr * o0r - sci * o0i, scr * o0i + sci * o0r
            else:
                o0r, o0i = scr * o0r, scr * o0i
        or_ref[:, 0:1, :, :] = o0r
        oi_ref[:, 0:1, :, :] = o0i

        o1r = mr10 * s0r - mi10 * s0i + mr11 * s1r - mi11 * s1i
        o1i = mr10 * s0i + mi10 * s0r + mr11 * s1i + mi11 * s1r
        if per_batch_scale:
            if complex_scale:
                o1r, o1i = scr * o1r - sci * o1i, scr * o1i + sci * o1r
            else:
                o1r, o1i = scr * o1r, scr * o1i
        or_ref[:, 1:2, :, :] = o1r
        oi_ref[:, 1:2, :, :] = o1i

    return kernel


def _pick_sublane_block(rt, cap):
    """Largest d | rt with d % 8 == 0 (sublane-dense) or d == rt, d <= cap."""
    cap = max(1, min(rt, cap))
    for d in range(cap, 0, -1):
        if rt % d == 0 and (d % 8 == 0 or d == rt):
            return d
    return 8 if rt % 8 == 0 else rt


def _largest_divisor_leq(n, cap):
    cap = max(1, min(n, cap))
    for d in range(cap, 0, -1):
        if n % d == 0:
            return d
    return 1


def _choose_lane(r, batch, per_batch_scale):
    """Lane width: a multiple of 128 (dense vst) that divides r and, for a
    per-batch scale, a multiple of batch so a single tiny (1, lane) scale row
    is valid for every block and sublane row (never materialised at state size)."""
    req = batch if per_batch_scale else 1
    lane = _LANE * req // math.gcd(_LANE, req)     # lcm(128, req)
    if r % lane == 0:
        return lane
    # TODO(synk): for awkward batch sizes keep lane=128 with a per-block rotated
    # scale table (index_map-selected row) instead of widening to the full axis.
    return r


def _scale_apply_planar(state_re, state_im, gate, scale, target, n_qubits,
                        block_budget_elems, donate_state):
    batch = state_re.shape[-1]
    p = 2 ** target                                  # pre-target qubit axes, flattened
    r = (2 ** (n_qubits - 1 - target)) * batch       # post-target axes x batch

    scale = jnp.asarray(scale).reshape(-1)
    if scale.shape[0] not in (1, batch):
        raise ValueError("scale must be a scalar or have shape (batch,)")
    scalar_scale = scale.shape[0] == 1
    per_batch_scale = not scalar_scale
    complex_scale = bool(jnp.iscomplexobj(scale))

    # TODO(synk): float64/complex128 inputs are computed in float32 here;
    # pyqtorch's double-precision path would need f64 planes (not supported).
    sr = state_re.astype(jnp.float32)
    si = state_im.astype(jnp.float32)

    # Fold a scalar ScaleBlock factor (real or complex) into the 2x2 gate:
    # the kernel then does no scale work at all.
    gate = jnp.asarray(gate).reshape(2, 2)
    if scalar_scale:
        gate = gate * scale.reshape(())

    g8 = jnp.concatenate(
        [jnp.real(gate).reshape(4), jnp.imag(gate).reshape(4)]
    ).astype(jnp.float32)

    lane = _choose_lane(r, batch, per_batch_scale)
    rt = r // lane

    # Free row-major view (no moveaxis): target qubit is the size-2 axis.
    sr = sr.reshape(p, 2, rt, lane)
    si = si.reshape(p, 2, rt, lane)

    # Per-lane scale rows (pattern repeats every `batch` lanes) - never state-sized.
    scale_rows = ()
    if per_batch_scale:
        sc_vec = jnp.tile(scale, lane // batch)
        scale_rows = (jnp.real(sc_vec).astype(jnp.float32).reshape(1, lane),)
        if complex_scale:
            scale_rows += (jnp.imag(sc_vec).astype(jnp.float32).reshape(1, lane),)

    # Block sizes: sublane-dense BT first, then fill with BP, under the budget.
    bt = _pick_sublane_block(rt, max(1, block_budget_elems // (2 * lane)))
    bp = _largest_divisor_leq(p, max(1, block_budget_elems // (2 * bt * lane)))
    # Keep >= 2 grid steps along a "parallel" axis so both v7x TensorCores get
    # work and the DMA pipeline has something to overlap.
    if (p // bp) * (rt // bt) < 2:
        if rt % 16 == 0:
            bt = _pick_sublane_block(rt, rt // 2)
        elif p > 1:
            bp = _largest_divisor_leq(p, p // 2)
    grid = (p // bp, rt // bt)

    state_spec = pl.BlockSpec((bp, 2, bt, lane), lambda i, j: (i, 0, j, 0))
    row_spec = pl.BlockSpec((1, lane), lambda i, j: (0, 0))

    in_specs = ([pl.BlockSpec(memory_space=pltpu.MemorySpace.SMEM)]   # gate scalars
                + [row_spec] * len(scale_rows)                        # scale rows
                + [state_spec, state_spec])                           # state planes
    n_lead = 1 + len(scale_rows)
    io_aliases = {n_lead: 0, n_lead + 1: 1} if donate_state else {}

    out_r, out_i = pl.pallas_call(
        _make_kernel(per_batch_scale, complex_scale),
        grid=grid,
        in_specs=in_specs,
        out_specs=(state_spec, state_spec),
        out_shape=(
            jax.ShapeDtypeStruct((p, 2, rt, lane), jnp.float32),
            jax.ShapeDtypeStruct((p, 2, rt, lane), jnp.float32),
        ),
        input_output_aliases=io_aliases,
        compiler_params=pltpu.CompilerParams(
            dimension_semantics=("parallel", "parallel"),
            vmem_limit_bytes=_VMEM_LIMIT_BYTES),
    )(g8, *scale_rows, sr, si)

    shape = state_re.shape
    return out_r.reshape(shape), out_i.reshape(shape)


@partial(jax.jit, static_argnums=(4, 5),
         static_argnames=("block_budget_elems", "donate_state"))
def scale_pyq_operation_planar(state_re, state_im, gate, scale, target, n_qubits,
                               *, block_budget_elems=_DEFAULT_BLOCK_BUDGET,
                               donate_state=False):
    """Fast path: state carried as two float32 planes of shape (2,)*n_qubits+(batch,).

    A circuit loop should thread (state_re, state_im) through its gates and
    convert to/from complex once per circuit, so the state crosses HBM exactly
    once per gate.  Set donate_state=True (and donate the planar buffers from
    the caller) to update the state in place via input_output_aliases.
    """
    return _scale_apply_planar(state_re, state_im, gate, scale, target, n_qubits,
                               block_budget_elems, donate_state)


@partial(jax.jit, static_argnums=(3, 4), static_argnames=("block_budget_elems",))
def scale_pyq_operation(state, gate, scale, target, n_qubits, *,
                        block_budget_elems=_DEFAULT_BLOCK_BUDGET):
    """Module-compatible API:  scale * (2x2 `gate` applied on qubit `target`).

    state: complex, shape (2,)*n_qubits + (batch,)   (pyqtorch layout)
    gate : complex, shape (2, 2)                     (PrimitiveBlock unitary)
    scale: scalar or (batch,), real or complex       (values[param_name])

    The complex<->planar conversion here is the one extra HBM pass; use
    scale_pyq_operation_planar in a circuit loop to amortise it per circuit.
    """
    sr = jnp.real(state).astype(jnp.float32)
    si = jnp.imag(state).astype(jnp.float32)
    out_r, out_i = _scale_apply_planar(sr, si, gate, scale, target, n_qubits,
                                       block_budget_elems, True)
    return jax.lax.complex(out_r, out_i).astype(state.dtype)


if __name__ == "__main__":
    n_qubits = 11
    batch = 8
    target = 2

    key = jax.random.PRNGKey(0)
    k1, k2, k3, k4 = jax.random.split(key, 4)

    state_shape = (2,) * n_qubits + (batch,)
    state = (jax.random.normal(k1, state_shape, dtype=jnp.float32)
             + 1j * jax.random.normal(k2, state_shape, dtype=jnp.float32)
             ).astype(jnp.complex64)

    # Wrapped PrimitiveBlock unitary: RX(theta).
    theta = jnp.float32(0.3)
    c = jnp.cos(theta / 2.0)
    s = jnp.sin(theta / 2.0)
    gate = jnp.array([[c, -1j * s], [-1j * s, c]], dtype=jnp.complex64)

    def reference(sc):
        return jnp.moveaxis(
            jnp.tensordot(gate, jnp.moveaxis(state, target, 0), axes=1), 0, target
        ) * sc

    # 1) Module-compatible complex API, per-batch real scale.  Small block
    #    budget so this toy state still exercises a multi-step (4, 2) grid.
    scale = jax.random.uniform(k3, (batch,), dtype=jnp.float32) + 0.5
    out = jax.block_until_ready(
        scale_pyq_operation(state, gate, scale, target, n_qubits,
                            block_budget_elems=2048))
    assert out.shape == state.shape and out.dtype == state.dtype
    assert jnp.allclose(out, reference(scale), atol=1e-5, rtol=1e-5)

    # 2) Planar fast path (what a circuit loop should carry), complex scalar
    #    scale -> folded into the gate; default (large) tiles + >=2-step grid.
    cscale = jnp.complex64(0.7 - 0.2j)
    sr, si = jnp.real(state), jnp.imag(state)
    our, oui = jax.block_until_ready(
        scale_pyq_operation_planar(sr, si, gate, cscale, target, n_qubits))
    assert jnp.allclose(jax.lax.complex(our, oui), reference(cscale),
                        atol=1e-5, rtol=1e-5)

    # 3) Per-batch complex scale (exercises the full scale path in the kernel).
    cbatch = (jax.random.uniform(k4, (batch,), dtype=jnp.float32)
              + 1j * jax.random.uniform(k3, (batch,), dtype=jnp.float32))
    out3 = jax.block_until_ready(
        scale_pyq_operation(state, gate, cbatch, target, n_qubits))
    assert jnp.allclose(out3, reference(cbatch), atol=1e-5, rtol=1e-5)

    print("KERNEL_OK")
</pallas_src>

<mosaic_0001>
module attributes {stable_mosaic.version = 11 : i64} {
  func.func @kernel(%arg0: i32, %arg1: i32, %arg2: memref<8xf32, #tpu.memory_space<smem>>, %arg3: memref<1x128xf32, #tpu.memory_space<vmem>>, %arg4: memref<1x2x8x128xf32, #tpu.memory_space<vmem>>, %arg5: memref<1x2x8x128xf32, #tpu.memory_space<vmem>>, %arg6: memref<1x2x8x128xf32, #tpu.memory_space<vmem>>, %arg7: memref<1x2x8x128xf32, #tpu.memory_space<vmem>>) attributes {dimension_semantics = [#tpu.dimension_semantics<parallel>, #tpu.dimension_semantics<parallel>], iteration_bounds = array<i64: 4, 2>, scalar_prefetch = 0 : i64, scratch_operands = 0 : i64, tpu.core_type = #tpu.core_type<tc>, window_params = [{transform_indices = @transform_0, window_bounds = array<i64: 8>}, {pipeline_mode = #tpu.pipeline_mode<synchronous>, transform_indices = @transform_1, window_bounds = array<i64: 1, 128>}, {transform_indices = @transform_2, window_bounds = array<i64: 1, 2, 8, 128>}, {transform_indices = @transform_3, window_bounds = array<i64: 1, 2, 8, 128>}, {transform_indices = @transform_4, window_bounds = array<i64: 1, 2, 8, 128>}, {transform_indices = @transform_5, window_bounds = array<i64: 1, 2, 8, 128>}]} {
    %c0 = arith.constant 0 : index
    %0 = memref.load %arg2[%c0] : memref<8xf32, #tpu.memory_space<smem>>
    %c1 = arith.constant 1 : index
    %1 = memref.load %arg2[%c1] : memref<8xf32, #tpu.memory_space<smem>>
    %c2 = arith.constant 2 : index
    %2 = memref.load %arg2[%c2] : memref<8xf32, #tpu.memory_space<smem>>
    %c3 = arith.constant 3 : index
    %3 = memref.load %arg2[%c3] : memref<8xf32, #tpu.memory_space<smem>>
    %c4 = arith.constant 4 : index
    %4 = memref.load %arg2[%c4] : memref<8xf32, #tpu.memory_space<smem>>
    %c5 = arith.constant 5 : index
    %5 = memref.load %arg2[%c5] : memref<8xf32, #tpu.memory_space<smem>>
    %c6 = arith.constant 6 : index
    %6 = memref.load %arg2[%c6] : memref<8xf32, #tpu.memory_space<smem>>
    %c7 = arith.constant 7 : index
    %7 = memref.load %arg2[%c7] : memref<8xf32, #tpu.memory_space<smem>>
    %c0_0 = arith.constant 0 : index
    %c0_1 = arith.constant 0 : index
    %8 = vector.load %arg3[%c0_0, %c0_1] : memref<1x128xf32, #tpu.memory_space<vmem>>, vector<1x128xf32>
    %c0_2 = arith.constant 0 : index
    %c0_3 = arith.constant 0 : index
    %c0_4 = arith.constant 0 : index
    %c0_5 = arith.constant 0 : index
    %9 = vector.load %arg4[%c0_2, %c0_3, %c0_4, %c0_5] : memref<1x2x8x128xf32, #tpu.memory_space<vmem>>, vector<1x1x8x128xf32>
    %c0_6 = arith.constant 0 : index
    %c1_7 = arith.constant 1 : index
    %c0_8 = arith.constant 0 : index
    %c0_9 = arith.constant 0 : index
    %10 = vector.load %arg4[%c0_6, %c1_7, %c0_8, %c0_9] : memref<1x2x8x128xf32, #tpu.memory_space<vmem>>, vector<1x1x8x128xf32>
    %c0_10 = arith.constant 0 : index
    %c0_11 = arith.constant 0 : index
    %c0_12 = arith.constant 0 : index
    %c0_13 = arith.constant 0 : index
    %11 = vector.load %arg5[%c0_10, %c0_11, %c0_12, %c0_13] : memref<1x2x8x128xf32, #tpu.memory_space<vmem>>, vector<1x1x8x128xf32>
    %c0_14 = arith.constant 0 : index
    %c1_15 = arith.constant 1 : index
    %c0_16 = arith.constant 0 : index
    %c0_17 = arith.constant 0 : index
    %12 = vector.load %arg5[%c0_14, %c1_15, %c0_16, %c0_17] : memref<1x2x8x128xf32, #tpu.memory_space<vmem>>, vector<1x1x8x128xf32>
    %13 = vector.broadcast %0 : f32 to vector<1x1x8x128xf32>
    %14 = arith.mulf %13, %9 : vector<1x1x8x128xf32>
    %15 = vector.broadcast %4 : f32 to vector<1x1x8x128xf32>
    %16 = arith.mulf %15, %11 : vector<1x1x8x128xf32>
    %17 = arith.subf %14, %16 : vector<1x1x8x128xf32>
    %18 = vector.broadcast %1 : f32 to vector<1x1x8x128xf32>
    %19 = arith.mulf %18, %10 : vector<1x1x8x128xf32>
    %20 = arith.addf %17, %19 : vector<1x1x8x128xf32>
    %21 = vector.broadcast %5 : f32 to vector<1x1x8x128xf32>
    %22 = arith.mulf %21, %12 : vector<1x1x8x128xf32>
    %23 = arith.subf %20, %22 : vector<1x1x8x128xf32>
    %24 = vector.broadcast %0 : f32 to vector<1x1x8x128xf32>
    %25 = arith.mulf %24, %11 : vector<1x1x8x128xf32>
    %26 = vector.broadcast %4 : f32 to vector<1x1x8x128xf32>
    %27 = arith.mulf %26, %9 : vector<1x1x8x128xf32>
    %28 = arith.addf %25, %27 : vector<1x1x8x128xf32>
    %29 = vector.broadcast %1 : f32 to vector<1x1x8x128xf32>
    %30 = arith.mulf %29, %12 : vector<1x1x8x128xf32>
    %31 = arith.addf %28, %30 : vector<1x1x8x128xf32>
    %32 = vector.broadcast %5 : f32 to vector<1x1x8x128xf32>
    %33 = arith.mulf %32, %10 : vector<1x1x8x128xf32>
    %34 = arith.addf %31, %33 : vector<1x1x8x128xf32>
    %35 = vector.shape_cast %8 : vector<1x128xf32> to vector<1x1x1x128xf32>
    %36 = vector.broadcast %35 : vector<1x1x1x128xf32> to vector<1x1x8x128xf32>
    %37 = arith.mulf %36, %23 : vector<1x1x8x128xf32>
    %38 = vector.shape_cast %8 : vector<1x128xf32> to vector<1x1x1x128xf32>
    %39 = vector.broadcast %38 : vector<1x1x1x128xf32> to vector<1x1x8x128xf32>
    %40 = arith.mulf %39, %34 : vector<1x1x8x128xf32>
    %c0_18 = arith.constant 0 : index
    %c0_19 = arith.constant 0 : index
    %c0_20 = arith.constant 0 : index
    %c0_21 = arith.constant 0 : index
    %41 = vector.load %arg6[%c0_18, %c0_19, %c0_20, %c0_21] : memref<1x2x8x128xf32, #tpu.memory_space<vmem>>, vector<1x1x8x128xf32>
    tpu.vector_store %arg6[%c0_18, %c0_19, %c0_20, %c0_21], %37 {strides = array<i32>} : memref<1x2x8x128xf32, #tpu.memory_space<vmem>>, vector<1x1x8x128xf32>,
    %c0_22 = arith.constant 0 : index
    %c0_23 = arith.constant 0 : index
    %c0_24 = arith.constant 0 : index
    %c0_25 = arith.constant 0 : index
    %42 = vector.load %arg7[%c0_22, %c0_23, %c0_24, %c0_25] : memref<1x2x8x128xf32, #tpu.memory_space<vmem>>, vector<1x1x8x128xf32>
    tpu.vector_store %arg7[%c0_22, %c0_23, %c0_24, %c0_25], %40 {strides = array<i32>} : memref<1x2x8x128xf32, #tpu.memory_space<vmem>>, vector<1x1x8x128xf32>,
    %43 = vector.broadcast %2 : f32 to vector<1x1x8x128xf32>
    %44 = arith.mulf %43, %9 : vector<1x1x8x128xf32>
    %45 = vector.broadcast %6 : f32 to vector<1x1x8x128xf32>
    %46 = arith.mulf %45, %11 : vector<1x1x8x128xf32>
    %47 = arith.subf %44, %46 : vector<1x1x8x128xf32>
    %48 = vector.broadcast %3 : f32 to vector<1x1x8x128xf32>
    %49 = arith.mulf %48, %10 : vector<1x1x8x128xf32>
    %50 = arith.addf %47, %49 : vector<1x1x8x128xf32>
    %51 = vector.broadcast %7 : f32 to vector<1x1x8x128xf32>
    %52 = arith.mulf %51, %12 : vector<1x1x8x128xf32>
    %53 = arith.subf %50, %52 : vector<1x1x8x128xf32>
    %54 = vector.broadcast %2 : f32 to vector<1x1x8x128xf32>
    %55 = arith.mulf %54, %11 : vector<1x1x8x128xf32>
    %56 = vector.broadcast %6 : f32 to vector<1x1x8x128xf32>
    %57 = arith.mulf %56, %9 : vector<1x1x8x128xf32>
    %58 = arith.addf %55, %57 : vector<1x1x8x128xf32>
    %59 = vector.broadcast %3 : f32 to vector<1x1x8x128xf32>
    %60 = arith.mulf %59, %12 : vector<1x1x8x128xf32>
    %61 = arith.addf %58, %60 : vector<1x1x8x128xf32>
    %62 = vector.broadcast %7 : f32 to vector<1x1x8x128xf32>
    %63 = arith.mulf %62, %10 : vector<1x1x8x128xf32>
    %64 = arith.addf %61, %63 : vector<1x1x8x128xf32>
    %65 = vector.shape_cast %8 : vector<1x128xf32> to vector<1x1x1x128xf32>
    %66 = vector.broadcast %65 : vector<1x1x1x128xf32> to vector<1x1x8x128xf32>
    %67 = arith.mulf %66, %53 : vector<1x1x8x128xf32>
    %68 = vector.shape_cast %8 : vector<1x128xf32> to vector<1x1x1x128xf32>
    %69 = vector.broadcast %68 : vector<1x1x1x128xf32> to vector<1x1x8x128xf32>
    %70 = arith.mulf %69, %64 : vector<1x1x8x128xf32>
    %c0_26 = arith.constant 0 : index
    %c1_27 = arith.constant 1 : index
    %c0_28 = arith.constant 0 : index
    %c0_29 = arith.constant 0 : index
    %71 = vector.load %arg6[%c0_26, %c1_27, %c0_28, %c0_29] : memref<1x2x8x128xf32, #tpu.memory_space<vmem>>, vector<1x1x8x128xf32>
    tpu.vector_store %arg6[%c0_26, %c1_27, %c0_28, %c0_29], %67 {strides = array<i32>} : memref<1x2x8x128xf32, #tpu.memory_space<vmem>>, vector<1x1x8x128xf32>,
    %c0_30 = arith.constant 0 : index
    %c1_31 = arith.constant 1 : index
    %c0_32 = arith.constant 0 : index
    %c0_33 = arith.constant 0 : index
    %72 = vector.load %arg7[%c0_30, %c1_31, %c0_32, %c0_33] : memref<1x2x8x128xf32, #tpu.memory_space<vmem>>, vector<1x1x8x128xf32>
    tpu.vector_store %arg7[%c0_30, %c1_31, %c0_32, %c0_33], %70 {strides = array<i32>} : memref<1x2x8x128xf32, #tpu.memory_space<vmem>>, vector<1x1x8x128xf32>,
    return
  }
  func.func @transform_0(%arg0: i32, %arg1: i32) -> i32 {
    %c0_i32 = arith.constant 0 : i32
    %c0_i32_0 = arith.constant 0 : i32
    return %c0_i32 : i32
  }
  func.func @transform_1(%arg0: i32, %arg1: i32) -> (i32, i32) {
    %c0_i32 = arith.constant 0 : i32
    %c0_i32_0 = arith.constant 0 : i32
    %c0_i32_1 = arith.constant 0 : i32
    return %c0_i32, %c0_i32_0 : i32, i32
  }
  func.func @transform_2(%arg0: i32, %arg1: i32) -> (i32, i32, i32, i32) {
    %c0_i32 = arith.constant 0 : i32
    %c0_i32_0 = arith.constant 0 : i32
    %c0_i32_1 = arith.constant 0 : i32
    return %arg0, %c0_i32, %arg1, %c0_i32_0 : i32, i32, i32, i32
  }
  func.func @transform_3(%arg0: i32, %arg1: i32) -> (i32, i32, i32, i32) {
    %c0_i32 = arith.constant 0 : i32
    %c0_i32_0 = arith.constant 0 : i32
    %c0_i32_1 = arith.constant 0 : i32
    return %arg0, %c0_i32, %arg1, %c0_i32_0 : i32, i32, i32, i32
  }
  func.func @transform_4(%arg0: i32, %arg1: i32) -> (i32, i32, i32, i32) {
    %c0_i32 = arith.constant 0 : i32
    %c0_i32_0 = arith.constant 0 : i32
    %c0_i32_1 = arith.constant 0 : i32
    return %arg0, %c0_i32, %arg1, %c0_i32_0 : i32, i32, i32, i32
  }
  func.func @transform_5(%arg0: i32, %arg1: i32) -> (i32, i32, i32, i32) {
    %c0_i32 = arith.constant 0 : i32
    %c0_i32_0 = arith.constant 0 : i32
    %c0_i32_1 = arith.constant 0 : i32
    return %arg0, %c0_i32, %arg1, %c0_i32_0 : i32, i32, i32, i32
  }
}

</mosaic_0001>

<bundles_post_ra>
// kernel: custom-call
= control target key start
LH: loop header
LB: loop body
LE: loop exit
PB: predicated region body
PF: predicated region fallthrough
CT: control target
= control target key end

     0   :  { %2 = vsyncpa [#allocation0], 0  ;;  %s47_s0 = inlined_call_operand.hbm [shape: c64[2,2], index: 0, kind: input, shape index: {}]   ;;  %s48_s1 = inlined_call_operand.vmem [shape: f32[2,2], index: 1, kind: output, shape index: {}]  }
   0x1   :  { %s3_s8 = sshll.u32 %s48_s1, 4  ;;  %s4_s8 = int_to_ptr.vmem [resolvable:$true] %s3_s8 }
   0x2   :  { %s17_s9 = scalar_lea.vmem %s4_s8, 32  ;;  %p22_p1 = scmp.lt.s32.totalorder %s4_s8, %s4_s8 }
   0x3   :  { %p18_p0 = scmp.ne.s32.totalorder %s4_s8, %s17_s9  ;;  %p23_p2 = scmp.lt.s32.totalorder %s17_s9, %s17_s9 }
   0x5   :  { %p24_p3 = por %p23_p2, %p22_p1 }
   0x7   :  { %p25_p4 = pnand %p24_p3, %p18_p0 }
   0x9   :  { %28 = shalt.err (!%p25_p4)  }
   0xa   :  { %6 = dma.hbm_to_vmem [thread:$0]  %s47_s0, 32, %s4_s8, [#allocation0] }
   0xb   :  { %29 = dma.done.wait [#allocation0], 32  }
   0xc   :  { %30 = vsyncadd [#allocation0], 4294967264 }
   0xd   :  { %8 = vsyncpa [#allocation0], 1 }

// kernel: custom-call.1
= control target key start
LH: loop header
LB: loop body
LE: loop exit
PB: predicated region body
PF: predicated region fallthrough
CT: control target
= control target key end

     0   :  { %s51_s0 = inlined_call_operand.hbm [shape: c64[2,2], index: 0, kind: input, shape index: {}]   ;;  %s52_s1 = inlined_call_operand.vmem [shape: f32[2,2], index: 1, kind: output, shape index: {}]  }
   0x1   :  { %s2_s8 = scalar_lea.hbm %s51_s0, 32 }
   0x2   :  { %3 = vsyncpa [#allocation0], 0  ;;  %s4_s11 = sshll.u32 %s52_s1, 4  ;;  %s5_s11 = int_to_ptr.vmem [resolvable:$true] %s4_s11 }
   0x3   :  { %s20_s12 = scalar_lea.vmem %s5_s11, 32  ;;  %p25_p1 = scmp.lt.s32.totalorder %s5_s11, %s5_s11 }
   0x4   :  { %p21_p0 = scmp.ne.s32.totalorder %s5_s11, %s20_s12  ;;  %p26_p2 = scmp.lt.s32.totalorder %s20_s12, %s20_s12 }
   0x6   :  { %p27_p3 = por %p26_p2, %p25_p1 }
   0x8   :  { %p28_p4 = pnand %p27_p3, %p21_p0 }
   0xa   :  { %31 = shalt.err (!%p28_p4)  }
   0xb   :  { %7 = dma.hbm_to_vmem [thread:$0]  %s2_s8, 32, %s5_s11, [#allocation0] }
   0xc   :  { %33 = dma.done.wait [#allocation0], 32  }
   0xd   :  { %34 = vsyncadd [#allocation0], 4294967264 }
   0xe   :  { %9 = vsyncpa [#allocation0], 1 }

// kernel: custom-call.3
= control target key start
LH: loop header
LB: loop body
LE: loop exit
PB: predicated region body
PF: predicated region fallthrough
CT: control target
= control target key end

     0   :  { %s51_s0 = inlined_call_operand.hbm [shape: c64[2,2,2,2,2,2,2,2,2,2,2,8], index: 0, kind: input, shape index: {}]   ;;  %s52_s1 = inlined_call_operand.vmem [shape: f32[2,2,2,2,2,2,2,2,2,2,2,8], index: 1, kind: output, shape index: {}]  }
   0x1   :  { %s2_s8 = scalar_lea.hbm %s51_s0, 32768 }
   0x2   :  { %3 = vsyncpa [#allocation0], 0  ;;  %s4_s11 = sshll.u32 %s52_s1, 4  ;;  %s5_s11 = int_to_ptr.vmem [resolvable:$true] %s4_s11 }
   0x3   :  { %s20_s12 = scalar_lea.vmem %s5_s11, 32768  ;;  %p25_p1 = scmp.lt.s32.totalorder %s5_s11, %s5_s11 }
   0x4   :  { %p21_p0 = scmp.ne.s32.totalorder %s5_s11, %s20_s12  ;;  %p26_p2 = scmp.lt.s32.totalorder %s20_s12, %s20_s12 }
   0x6   :  { %p27_p3 = por %p26_p2, %p25_p1 }
   0x8   :  { %p28_p4 = pnand %p27_p3, %p21_p0 }
   0xa   :  { %31 = shalt.err (!%p28_p4)  }
   0xb   :  { %7 = dma.hbm_to_vmem [thread:$0]  %s2_s8, 32768, %s5_s11, [#allocation0] }
   0xc   :  { %33 = dma.done.wait [#allocation0], 32768  }
   0xd   :  { %34 = vsyncadd [#allocation0], 4294934528 }
   0xe   :  { %9 = vsyncpa [#allocation0], 1 }

// kernel: tile.9
= control target key start
LH: loop header
LB: loop body
LE: loop exit
PB: predicated region body
PF: predicated region fallthrough
CT: control target
= control target key end

     0   :  { %s133_s10 = smov 120   ;;  %s134_s11 = smov 104   ;;  %vm3_vm0 = vcmask 64512   ;;  %vm9_vm1 = vcmask 1048512   ;;  %vm15_vm2 = vcmask 982912   ;;  %vm21_vm3 = vcmask 917312   ;;  %s209_s0 = inlined_call_operand.vmem [shape: f32[16,8], index: 0, kind: input, shape index: {}]   ;;  %s210_s1 = inlined_call_operand.vmem [shape: f32[1,128], index: 1, kind: output, shape index: {}]  }
   0x1   :  { %v103_v0 = vld [vmem:[%s209_s0 + $0xf] sm:$0x1]   ;;  %v105_v1 = vld [vmem:[%s209_s0 + $0xd] sm:$0x1]   ;;  %v104_v2 = vld [vmem:[%s209_s0 + $0xe] sm:$0x1]  }
   0x2   :  { %7 = vrot.lane.b32.xlu0 %v103_v0, %s133_s10  ;;  %19 = vrot.lane.b32.xlu1 %v105_v1, %s134_s11  ;;  %v106_v3 = vld [vmem:[%s209_s0 + $0xc] sm:$0x1]   ;;  %s135_s16 = smov 112   ;;  %s136_s17 = smov 96   ;;  %v107_v4 = vld [vmem:[%s209_s0 + $0xb] sm:$0x1]  }
   0x3   :  { %v108_v5 = vld [vmem:[%s209_s0 + $0xa] sm:$0x1]   ;;  %v2_v6 = vld [vmem:[%s209_s0] sm:$0x1]   ;;  %s137_s24 = smov 88   ;;  %s138_s25 = smov 80  }
   0x4   :  { %4 = vst.msk [vmem:[#allocation0] sm:$0x1] %vm3_vm0, %v2_v6   ;;  %v109_v7 = vld [vmem:[%s209_s0 + $0x9] sm:$0x1]   ;;  %v110_v8 = vld [vmem:[%s209_s0 + $0x8] sm:$0x1]  }
   0x5   :  { %s139_s30 = smov 72   ;;  %s140_s2 = smov 64   ;;  %v111_v9 = vld [vmem:[%s209_s0 + $0x7] sm:$0x1]   ;;  %v112_v10 = vld [vmem:[%s209_s0 + $0x6] sm:$0x1]  }
   0x6   :  { %13 = vrot.lane.b32.xlu0 %v104_v2, %s135_s16  ;;  %25 = vrot.lane.b32.xlu1 %v106_v3, %s136_s17  ;;  %s141_s7 = smov 56   ;;  %s142_s8 = smov 48   ;;  %v113_v11 = vld [vmem:[%s209_s0 + $0x5] sm:$0x1]   ;;  %v114_v12 = vld [vmem:[%s209_s0 + $0x4] sm:$0x1]  }
   0x7   :  { %s143_s13 = smov 40   ;;  %s144_s14 = smov 32   ;;  %v115_v13 = vld [vmem:[%s209_s0 + $0x3] sm:$0x1]   ;;  %v116_v14 = vld [vmem:[%s209_s0 + $0x2] sm:$0x1]  }
   0x8   :  { %s145_s19 = smov 24   ;;  %s146_s20 = smov 16   ;;  %v117_v15 = vld [vmem:[%s209_s0 + $0x1] sm:$0x1]   ;;  %vm27_vm4 = vcmask 851712   ;;  %vm33_vm5 = vcmask 786112  }
   0x9   :  { %s147_s0 = smov 8   ;;  %vm39_vm6 = vcmask 720512   ;;  %vm45_vm7 = vcmask 654912   ;;  %vm51_vm8 = vcmask 589312   ;;  %vm57_vm9 = vcmask 523712  }
   0xa   :  { %31 = vrot.lane.b32.xlu0 %v107_v4, %s137_s24  ;;  %37 = vrot.lane.b32.xlu1 %v108_v5, %s138_s25  ;;  %vm63_vm10 = vcmask 458112   ;;  %vm69_vm11 = vcmask 392512   ;;  %vm75_vm12 = vcmask 326912   ;;  %vm81_vm13 = vcmask 261312  }
   0xb   :  { %vm87_vm14 = vcmask 195712   ;;  %vm93_vm15 = vcmask 130112  }
   0xe   :  { %43 = vrot.lane.b32.xlu0 %v109_v7, %s139_s30  ;;  %49 = vrot.lane.b32.xlu1 %v110_v8, %s140_s2 }
  0x12   :  { %55 = vrot.lane.b32.xlu0 %v111_v9, %s141_s7  ;;  %61 = vrot.lane.b32.xlu1 %v112_v10, %s142_s8 }
  0x16   :  { %67 = vrot.lane.b32.xlu0 %v113_v11, %s143_s13  ;;  %73 = vrot.lane.b32.xlu1 %v114_v12, %s144_s14 }
  0x1a   :  { %79 = vrot.lane.b32.xlu0 %v115_v13, %s145_s19  ;;  %85 = vrot.lane.b32.xlu1 %v116_v14, %s146_s20 }
  0x1e   :  { %91 = vrot.lane.b32.xlu0 %v117_v15, %s147_s0 }
  0x74   :  { %v8_v16 = vpop.permute.xlu0 %7   ;;  %v20_v17 = vpop.permute.xlu1 %19  }
  0x75   :  { %10 = vst.msk [vmem:[#allocation0] sm:$0x1] %vm9_vm1, %v8_v16  }
  0x78   :  { %v14_v18 = vpop.permute.xlu0 %13   ;;  %v26_v19 = vpop.permute.xlu1 %25  }
  0x79   :  { %16 = vst.msk [vmem:[#allocation0] sm:$0x1] %vm15_vm2, %v14_v18  }
  0x7a   :  { %22 = vst.msk [vmem:[#allocation0] sm:$0x1] %vm21_vm3, %v20_v17  }
  0x7b   :  { %28 = vst.msk [vmem:[#allocation0] sm:$0x1] %vm27_vm4, %v26_v19  }
  0x7c   :  { %v32_v20 = vpop.permute.xlu0 %31   ;;  %v38_v21 = vpop.permute.xlu1 %37  }
  0x7d   :  { %34 = vst.msk [vmem:[#allocation0] sm:$0x1] %vm33_vm5, %v32_v20  }
  0x7e   :  { %40 = vst.msk [vmem:[#allocation0] sm:$0x1] %vm39_vm6, %v38_v21  }
  0x80   :  { %v44_v22 = vpop.permute.xlu0 %43   ;;  %v50_v23 = vpop.permute.xlu1 %49  }
  0x81   :  { %46 = vst.msk [vmem:[#allocation0] sm:$0x1] %vm45_vm7, %v44_v22  }
  0x82   :  { %52 = vst.msk [vmem:[#allocation0] sm:$0x1] %vm51_vm8, %v50_v23  }
  0x84   :  { %v56_v24 = vpop.permute.xlu0 %55   ;;  %v62_v25 = vpop.permute.xlu1 %61  }
  0x85   :  { %58 = vst.msk [vmem:[#allocation0] sm:$0x1] %vm57_vm9, %v56_v24  }
  0x86   :  { %64 = vst.msk [vmem:[#allocation0] sm:$0x1] %vm63_vm10, %v62_v25  }
  0x88   :  { %v68_v26 = vpop.permute.xlu0 %67   ;;  %v74_v27 = vpop.permute.xlu1 %73  }
  0x89   :  { %70 = vst.msk [vmem:[#allocation0] sm:$0x1] %vm69_vm11, %v68_v26  }
  0x8a   :  { %76 = vst.msk [vmem:[#allocation0] sm:$0x1] %vm75_vm12, %v74_v27  }
  0x8c   :  { %v80_v28 = vpop.permute.xlu0 %79   ;;  %v86_v29 = vpop.permute.xlu1 %85  }
  0x8d   :  { %82 = vst.msk [vmem:[#allocation0] sm:$0x1] %vm81_vm13, %v80_v28  }
  0x8e   :  { %88 = vst.msk [vmem:[#allocation0] sm:$0x1] %vm87_vm14, %v86_v29  }
  0x90   :  { %v92_v30 = vpop.permute.xlu0 %91  }
  0x91   :  { %94 = vst.msk [vmem:[#allocation0] sm:$0x1] %vm93_vm15, %v92_v30  }
  0x98   :  { %v99_v31 = vld [vmem:[#allocation0] sm:$0x1] }
  0x99   :  { %102 = vst [vmem:[%s210_s1] sm:$0x1] %v99_v31 }

// kernel: tile.8
= control target key start
LH: loop header
LB: loop body
LE: loop exit
PB: predicated region body
PF: predicated region fallthrough
CT: control target
= control target key end

     0   :  { %2 = vsyncpa [#allocation1], 0  ;;  %s45_s6 = smov [#allocation0]   ;;  %s65_s0 = inlined_call_operand.hbm [shape: f32[8], index: 0, kind: input, shape index: {}]   ;;  %s66_s1 = inlined_call_operand.vmem [shape: f32[16,8], index: 1, kind: output, shape index: {}]  }
   0x1   :  { %s9_s7 = sshll.u32 %s45_s6, 4  ;;  %s10_s7 = int_to_ptr.vmem [resolvable:$true] %s9_s7 }
   0x2   :  { %s31_s8 = scalar_lea.vmem %s10_s7, 16  ;;  %s35_s9 = scalar_lea.vmem %s10_s7, 32 }
   0x3   :  { %p32_p0 = scmp.ne.s32.totalorder %s10_s7, %s31_s8  ;;  %p36_p1 = scmp.lt.s32.totalorder %s10_s7, %s10_s7 }
   0x4   :  { %p37_p2 = scmp.lt.s32.totalorder %s35_s9, %s31_s8 }
   0x6   :  { %p38_p3 = por %p37_p2, %p36_p1 }
   0x8   :  { %p39_p4 = pnand %p38_p3, %p32_p0 }
   0xa   :  { %42 = shalt.err (!%p39_p4)
}
   0xb   :  { %12 = dma.hbm_to_vmem [thread:$0]  %s65_s0, 16, %s10_s7, [#allocation1]  }
   0xc   :  { %43 = dma.done.wait [#allocation1], 16  }
   0xd   :  { %44 = vsyncadd [#allocation1], 4294967280  ;;  %v16_v0 = vld [vmem:[#allocation0] ss:$0 sm:$0xff] }
   0xe   :  { %17 = vst [vmem:[%s66_s1] sm:$0xff] %v16_v0  ;;  %21 = vst [vmem:[%s66_s1 + $0x8] sm:$0xff] %v16_v0 }
   0xf   :  { %20 = vsyncpa [#allocation1], 1 }

// kernel: custom-call.2
= control target key start
LH: loop header
LB: loop body
LE: loop exit
PB: predicated region body
PF: predicated region fallthrough
CT: control target
= control target key end

     0   :  { %2 = vsyncpa [#allocation0], 0  ;;  %s47_s0 = inlined_call_operand.hbm [shape: c64[2,2,2,2,2,2,2,2,2,2,2,8], index: 0, kind: input, shape index: {}]   ;;  %s48_s1 = inlined_call_operand.vmem [shape: f32[2,2,2,2,2,2,2,2,2,2,2,8], index: 1, kind: output, shape index: {}]  }
   0x1   :  { %s3_s8 = sshll.u32 %s48_s1, 4  ;;  %s4_s8 = int_to_ptr.vmem [resolvable:$true] %s3_s8 }
   0x2   :  { %s17_s9 = scalar_lea.vmem %s4_s8, 32768  ;;  %p22_p1 = scmp.lt.s32.totalorder %s4_s8, %s4_s8 }
   0x3   :  { %p18_p0 = scmp.ne.s32.totalorder %s4_s8, %s17_s9  ;;  %p23_p2 = scmp.lt.s32.totalorder %s17_s9, %s17_s9 }
   0x5   :  { %p24_p3 = por %p23_p2, %p22_p1 }
   0x7   :  { %p25_p4 = pnand %p24_p3, %p18_p0 }
   0x9   :  { %28 = shalt.err (!%p25_p4)  }
   0xa   :  { %6 = dma.hbm_to_vmem [thread:$0]  %s47_s0, 32768, %s4_s8, [#allocation0] }
   0xb   :  { %29 = dma.done.wait [#allocation0], 32768  }
   0xc   :  { %30 = vsyncadd [#allocation0], 4294934528 }
   0xd   :  { %8 = vsyncpa [#allocation0], 1 }

// kernel: custom-call.4
= control target key start
LH: loop header
LB: loop body
LE: loop exit
PB: predicated region body
PF: predicated region fallthrough
CT: control target
= control target key end

     0   :  { %s92_s0 = inlined_call_operand.vmem [shape: f32[2,2,2,2,2,2,2,2,2,2,2,8], index: 0, kind: input, shape index: {}]   ;;  %s93_s1 = inlined_call_operand.vmem [shape: f32[2,2,2,2,2,2,2,2,2,2,2,8], index: 1, kind: input, shape index: {}]   ;;  %s94_s2 = inlined_call_operand.hbm [shape: c64[2,2,2,2,2,2,2,2,2,2,2,8], index: 2, kind: output, shape index: {}]  }
   0x1   :  { %s3_s11 = scalar_lea.hbm %s94_s2, 32768 }
   0x2   :  { %4 = vsyncpa [#allocation0], 0  ;;  %s5_s14 = sshll.u32 %s92_s0, 4  ;;  %s6_s14 = int_to_ptr.vmem [resolvable:$true] %s5_s14 }
   0x3   :  { %s18_s15 = scalar_lea.vmem %s6_s14, 32768  ;;  %p23_p1 = scmp.lt.s32.totalorder %s6_s14, %s6_s14 }
   0x4   :  { %p19_p0 = scmp.ne.s32.totalorder %s6_s14, %s18_s15  ;;  %p24_p2 = scmp.lt.s32.totalorder %s18_s15, %s18_s15 }
   0x6   :  { %p25_p3 = por %p24_p2, %p23_p1 }
   0x8   :  { %p26_p4 = pnand %p25_p3, %p19_p0 }
   0xa   :  { %29 = shalt.err (!%p26_p4)  }
   0xb   :  { %8 = dma.vmem_to_hbm [thread:$0]  %s6_s14, 32768, %s94_s2, [#allocation0] }
   0xc   :  { %61 = dma.done.wait [#allocation0], 32768  }
   0xd   :  { %62 = vsyncadd [#allocation0], 4294934528 }
   0xe   :  { %10 = vsyncpa [#allocation0], 1 }
   0xf   :  { %11 = vsyncpa [#allocation1], 0  ;;  %s12_s0 = sshll.u32 %s93_s1, 4  ;;  %s13_s0 = int_to_ptr.vmem [resolvable:$true] %s12_s0 }
  0x10   :  { %s38_s20 = scalar_lea.vmem %s13_s0, 32768  ;;  %p43_p6 = scmp.lt.s32.totalorder %s13_s0, %s13_s0 }
  0x11   :  { %p39_p5 = scmp.ne.s32.totalorder %s13_s0, %s38_s20  ;;  %p44_p7 = scmp.lt.s32.totalorder %s38_s20, %s38_s20 }
  0x13   :  { %p45_p8 = por %p44_p7, %p43_p6 }
  0x15   :  { %p46_p9 = pnand %p45_p8, %p39_p5 }
  0x17   :  { %49 = shalt.err (!%p46_p9)  }
  0x18   :  { %15 = dma.vmem_to_hbm [thread:$0]  %s13_s0, 32768, %s3_s11, [#allocation1] }
  0x19   :  { %63 = dma.done.wait [#allocation1], 32768  }
  0x1a   :  { %64 = vsyncadd [#allocation1], 4294934528 }
  0x1b   :  { %17 = vsyncpa [#allocation1], 1 }

// kernel: scale_pyq_operation.1
= control target key start
LH: loop header
LB: loop body
LE: loop exit
PB: predicated region body
PF: predicated region fallthrough
CT: control target
= control target key end

     0   :  { %s1016_s0 = inlined_call_operand.vmem [shape: f32[8], index: 0, kind: input, shape index: {}]   ;;  %s1017_s1 = inlined_call_operand.vmem [shape: f32[1,128], index: 1, kind: input, shape index: {}]   ;;  %s1018_s2 = inlined_call_operand.vmem [shape: f32[4,2,16,128], index: 2, kind: input, shape index: {}, may-alias: {2,4}]   ;;  %s1019_s3 = inlined_call_operand.vmem [shape: f32[4,2,16,128], index: 3, kind: input, shape index: {}, may-alias: {3,5}]   ;;  %s1020_s4 = inlined_call_operand.vmem [shape: f32[4,2,16,128], index: 4, kind: output, shape index: {0}, may-alias: {2,4}]   ;;  %s1021_s5 = inlined_call_operand.vmem [shape: f32[4,2,16,128], index: 5, kind: output, shape index: {1}, may-alias: {3,5}]  }
   0x1   :  { %1023 = sst [smem:[#allocation9_spill]] %s1016_s0 }
   0x2   :  { %11 = vsyncpa [#allocation3], 0  ;;  %s869_s18 = smov 0   ;;  %s871_s19 = smov 0  }
   0x3   :  { %s873_s20 = smov 0   ;;  %s875_s21 = smov 0  }
   0x4   :  { %s877_s22 = smov 0   ;;  %s879_s23 = smov 0  }
   0x5   :  { %s881_s24 = smov 0  }
   0x6 LB: > { %s659_s25 = sadd.s32 4294967295, %s836_s24   ;;  %s26_s26 = sadd.s32 1, %s828_s22  ;;  %s836_s24 = sphi %s881_s24, %s17_s24   ;;  %s832_s23 = sphi %s879_s23, %s1037_s23   ;;  %s828_s22 = sphi %s877_s22, %s1036_s22   ;;  %s824_s21 = sphi %s875_s21, %s1035_s21   ;;  %s820_s20 = sphi %s873_s20, %s1034_s20   ;;  %s816_s19 = sphi %s871_s19, %s1033_s19   ;;  %s812_s18 = sphi %s869_s18, %s1032_s18  }
   0x7   : > { %p27_p0 = scmp.ge.s32.totalorder %s26_s26, 2  ;;  %s29_s27 = sadd.s32 1, %s832_s23 }
   0x8   : > { %s80_s28 = sadd.s32 1, %s816_s19  ;;  %p87_p1 = scmp.ne.s32.totalorder %s816_s19, %s812_s18 }
   0x9   : > { %s1039_s26 = smov (%p27_p0, %s26_s26), 0  ;;  %s1041_s27 = smov (!%p27_p0, %s29_s27), %s832_s23 }
   0xa   : > { %s76_s29 = ssub.s32 %s828_s22, %s1039_s26  ;;  %p88_p2 = scmp.eq.s32.totalorder %s836_s24, 0 }
   0xb   : > { %p31_p3 = scmp.ge.s32.totalorder %s1041_s27, 4  ;;  %p147_p4 = scmp.eq.s32.totalorder %s659_s25, 7 }
   0xc   : > { %p916_p5 = por %p88_p2, %p87_p1  ;;  %p661_p6 = scmp.ge.s32.totalorder %s836_s24, 1 }
   0xd   : > { %s1043_s27 = smov (%p31_p3, %s1041_s27), 0  ;;  %p923_p7 = por %p147_p4, %p87_p1 }
   0xe   : > { %p188_p8 = scmp.lt.s32.totalorder %s836_s24, 9  ;;  %s75_s7 = ssub.s32 %s832_s23, %s1043_s27 }
   0xf   : > { %s1025_s6 = scalar_select %p923_p7, 1, 0 }
  0x10   : > { %s77_s8 = sor.u32 %s76_s29, %s75_s7  ;;  %p930_p9 = pnand %p661_p6, %p188_p8 }
  0x11   : > { %p78_p10 = scmp.eq.s32.totalorder %s77_s8, 0  ;;  %p934_p11 = scmp.eq.s32.totalorder %s659_s25, 0 }
  0x12   : > { %s1026_s9 = scalar_select %p930_p9, 1, 0 }
  0x13   : > { %p700_p12 = pneg %p930_p9  ;;  %s1028_s0 = sld [smem:[#allocation9_spill]] }
  0x14   : > { %s944_s14 = scalar_select %p78_p10, %s816_s19, %s80_s28  }
  0x15   : > { %p701_p13 = pnand %p934_p11, %p700_p12 }
  0x17   : > { %p765_p1 = pneg %p701_p13 }
  0x19   : > { %s201_s13 = sshll.u32 %s1028_s0, 4  ;;  %s202_s13 = int_to_ptr.vmem [resolvable:$true] %s201_s13 }
  0x1a   : > { %s763_s15 = scalar_lea.vmem %s202_s13, 16  ;;  %p771_p4 = scmp.lt.s32.totalorder %s202_s13, %s202_s13 }
  0x1b   : > { %p764_p0 = scmp.ne.s32.totalorder %s202_s13, %s763_s15  ;;  %p772_p6 = scmp.lt.s32.totalorder %s763_s15, %s763_s15 }
  0x1d   : > { %p766_p2 = pnand %p765_p1, %p764_p0  ;;  %p773_p8 = por %p772_p6, %p771_p4 }
  0x1f   : > { %p767_p3 = pneg %p766_p2 }
  0x21   : > { %p774_p7 = pnand %p773_p8, %p767_p3 }
  0x23   : > { %777 = shalt.err (!%p774_p7)
}
  0x24   : > { %s838_s16 = smov [#allocation2]   ;;  %p663_p9 = scmp.ge.s32.totalorder %s836_s24, 8 }
  0x25   : > { %703 = dma.vmem_to_smem (!%p701_p13), %s202_s13, 16, %s838_s16, [#allocation3]  }
  0x26   : > { %211 = sbr.rel (%p663_p9) target bundleno = 57 (0x39), region = 24 }
  0x2b   : > { %214 = sbr.rel (!%p916_p5) target bundleno = 50 (0x32), region = 28  ;;  %s216_s17 = sand.u32 (%p916_p5), 1, %s816_s19  }
  0x2c   : > { %s665_s25 = sshll.u32 (%p916_p5), %s832_s23, 2  ;;  %s664_s28 = sshll.u32 (%p916_p5), %s216_s17, 4 }
  0x2d   : > { %s220_s29 = sadd.s32 (%p916_p5), %s828_s22, %s665_s25  ;;  %s218_s13 = scalar_lea.vmem (%p916_p5), [#allocation4], %s664_s28 }
  0x2e   : > { %s666_s7 = sshll.u32 (%p916_p5), %s220_s29, 3 }
  0x2f   : > { %s222_s12 = scalar_lea.vmem (%p916_p5), %s1018_s2, %s666_s7 }
  0x30   : > { %v253_v0 = vld [vmem:[%s222_s12] sm:$0xff]  ;;  %v255_v1 = vld [vmem:[%s222_s12 + $0x10] sm:$0xff] }
  0x31   : > { %254 = vst [vmem:[%s218_s13] sm:$0xff] %v253_v0  ;;  %256 = vst [vmem:[%s218_s13 + $0x8] sm:$0xff] %v255_v1 }
  0x32 PF: > { %262 = sbr.rel (!%p916_p5) target bundleno = 57 (0x39), region = 66  ;;  %s264_s15 = sand.u32 (%p916_p5), 1, %s816_s19  }
  0x33   : > { %s668_s16 = sshll.u32 (%p916_p5), %s832_s23, 2  ;;  %s667_s17 = sshll.u32 (%p916_p5), %s264_s15, 4 }
  0x34   : > { %s268_s25 = sadd.s32 (%p916_p5), %s828_s22, %s668_s16  ;;  %s266_s28 = scalar_lea.vmem (%p916_p5), [#allocation5], %s667_s17 }
  0x35   : > { %s669_s29 = sshll.u32 (%p916_p5), %s268_s25, 3 }
  0x36   : > { %s270_s7 = scalar_lea.vmem (%p916_p5), %s1019_s3, %s669_s29 }
  0x37   : > { %v301_v2 = vld [vmem:[%s270_s7] sm:$0xff]  ;;  %v303_v3 = vld [vmem:[%s270_s7 + $0x10] sm:$0xff] }
  0x38   : > { %302 = vst [vmem:[%s266_s28] sm:$0xff] %v301_v2  ;;  %304 = vst [vmem:[%s266_s28 + $0x8] sm:$0xff] %v303_v3 }
  0x39 PF: > { %p1029_p5 = scmp.ne.s32.totalorder %s1026_s9, 0 }
  0x3b   : > { %313 = sbr.rel (%p1029_p5) target bundleno = 109 (0x6d), region = 104 }
  0x40   : > { %807 = dma.done.wait (%p934_p11), [#allocation3], 16  }
  0x41   : > { %809 = vsyncadd (%p934_p11), [#allocation3], 4294967280  ;;  %s320_s30 = sand.u32 1, %s812_s18  }
  0x42   : > { %s972_s0 = sshll.u32 %s320_s30, 4 }
  0x43   : > { %s322_s11 = scalar_lea.vmem [#allocation4], %s972_s0  ;;  %s329_s12 = scalar_lea.vmem [#allocation5], %s972_s0 }
  0x44   : > { %333 = sfence }
  0x45   : > { %s362_s13 = sld [smem:[#allocation2]]  ;;  %v371_v4 = vld [vmem:[%s322_s11] sm:$0xff]  ;;  %v683_v6 = vld [vmem:[%s322_s11 + $0x8] sm:$0xff]  ;;  %s355_s7 = scalar_lea.vmem [#allocation6], %s972_s0 }
  0x46   : > { %s676_s15 = sld [smem:[#allocation2 + $0x1]]  ;;  %v374_v5 = vld [vmem:[%s329_s12] sm:$0xff]  ;;  %v684_v7 = vld [vmem:[%s329_s12 + $0x8] sm:$0xff]  ;;  %s361_s28 = scalar_lea.vmem [#allocation7], %s972_s0 }
  0x47   : > { %s679_s16 = sld [smem:[#allocation2 + $0x4]]  ;;  %v685_v32 = vld [vmem:[%s1017_s1] ss:$0 sm:$0xff]  ;;  %p1030_p7 = scmp.ne.s32.totalorder %s1025_s6, 0 }
  0x48   : > { %s680_s9 = sld [smem:[#allocation2 + $0x5]]  ;;  %s690_s30 = sshll.u32 (%p1030_p7), %s824_s21, 2 }
  0x49   : > { %s677_s17 = sld [smem:[#allocation2 + $0x2]]  ;;  %s441_s11 = sadd.s32 (%p1030_p7), %s820_s20, %s690_s30 }
  0x4a   : > { %s678_s25 = sld [smem:[#allocation2 + $0x3]]  ;;  %s691_s12 = sshll.u32 (%p1030_p7), %s441_s11, 3 }
  0x4b   : > { %v377_v8 = vstv %s362_s13  ;;  %s681_s10 = sld [smem:[#allocation2 + $0x6]]  ;;  %s443_s0 = scalar_lea.vmem (%p1030_p7), %s1020_s4, %s691_s12 }
  0x4c   : > { %v378_v9 = vmul.f32 %v377_v8, %v371_v4  ;;  %v382_v10 = vstv %s676_s15  ;;  %v388_v11 = vmul.f32 %v377_v8, %v374_v5  ;;  %s682_s18 = sld [smem:[#allocation2 + $0x7]] }
  0x4d   : > { %v379_v12 = vstv %s679_s16  ;;  %v383_v13 = vmul.f32 %v683_v6, %v382_v10  ;;  %v391_v17 = vmul.f32 %v684_v7, %v382_v10 }
  0x4e   : > { %v380_v14 = vmul.f32 %v379_v12, %v374_v5  ;;  %v385_v15 = vstv %s680_s9  ;;  %v389_v16 = vmul.f32 %v379_v12, %v371_v4 }
  0x4f   : > { %v386_v18 = vmul.f32 %v684_v7, %v385_v15  ;;  %v393_v19 = vmul.f32 %v683_v6, %v385_v15  ;;  %v405_v20 = vstv %s677_s17 }
  0x50   : > { %v381_v21 = vsub.f32 %v378_v9, %v380_v14  ;;  %v390_v22 = vadd.f32 %v389_v16, %v388_v11  ;;  %v406_v23 = vmul.f32 %v405_v20, %v371_v4  ;;  %v410_v24 = vstv %s678_s25 }
  0x51   : > { %v407_v25 = vstv %s681_s10  ;;  %v411_v26 = vmul.f32 %v683_v6, %v410_v24  ;;  %v416_v27 = vmul.f32 %v405_v20, %v374_v5  ;;  %v419_v34 = vmul.f32 %v684_v7, %v410_v24 }
  0x52   : > { %v384_v28 = vadd.f32 %v383_v13, %v381_v21  ;;  %v392_v29 = vadd.f32 %v391_v17, %v390_v22  ;;  %v408_v30 = vmul.f32 %v407_v25, %v374_v5  ;;  %v413_v31 = vstv %s682_s18 }
  0x53   : > { %v417_v33 = vmul.f32 %v407_v25, %v371_v4  ;;  %v414_v38 = vmul.f32 %v684_v7, %v413_v31  ;;  %v421_v40 = vmul.f32 %v683_v6, %v413_v31 }
  0x54   : > { %v387_v35 = vsub.f32 %v384_v28, %v386_v18  ;;  %v394_v36 = vadd.f32 %v393_v19, %v392_v29  ;;  %v409_v37 = vsub.f32 %v406_v23, %v408_v30 }
  0x55   : > { %v418_v39 = vadd.f32 %v417_v33, %v416_v27 }
  0x56   : > { %v401_v41 = vmul.f32 %v685_v32, %v387_v35  ;;  %v402_v42 = vmul.f32 %v685_v32, %v394_v36  ;;  %v412_v43 = vadd.f32 %v411_v26, %v409_v37 }
  0x57   : > { %v420_v44 = vadd.f32 %v419_v34, %v418_v39 }
  0x58   : > { %403 = vst [vmem:[%s355_s7] sm:$0xff] %v401_v41  ;;  %404 = vst [vmem:[%s361_s28] sm:$0xff] %v402_v42  ;;  %v415_v45 = vsub.f32 %v412_v43, %v414_v38 }
  0x59   : > { %v422_v46 = vadd.f32 %v421_v40, %v420_v44  ;;  %439 = sbr.rel (!%p1030_p7) target bundleno = 101 (0x65), region = 120 }
  0x5a   : > { %v423_v47 = vmul.f32 %v685_v32, %v415_v45 }
  0x5b   : > { %v424_v48 = vmul.f32 %v685_v32, %v422_v46 }
  0x5c   : > { %686 = vst [vmem:[%s355_s7 + $0x8] sm:$0xff] %v423_v47 }
  0x5d   : > { %687 = vst [vmem:[%s361_s28 + $0x8] sm:$0xff] %v424_v48 }
  0x5f   : > { %v474_v49 = vld [vmem:[%s355_s7] sm:$0xff] }
  0x60   : > { %475 = vst [vmem:[%s443_s0] sm:$0xff] %v474_v49 }
  0x63   : > { %v476_v50 = vld [vmem:[%s355_s7 + $0x8] sm:$0xff] }
  0x64   : > { %477 = vst [vmem:[%s443_s0 + $0x10] sm:$0xff] %v476_v50 }
  0x65 PF: > { %p1031_p9 = scmp.ne.s32.totalorder %s1025_s6, 0 }
  0x66   : > { %s692_s16 = sshll.u32 (%p1031_p9), %s824_s21, 2  ;;  %v518_v51 = vld [vmem:[%s361_s28] sm:$0xff] (%p1031_p9) }
  0x67   : > { %483 = sbr.rel (!%p1031_p9) target bundleno = 109 (0x6d), region = 158  ;;  %s485_s9 = sadd.s32 (%p1031_p9), %s820_s20, %s692_s16 }
  0x68   : > { %s693_s17 = sshll.u32 (%p1031_p9), %s485_s9, 3 }
  0x69   : > { %s487_s18 = scalar_lea.vmem (%p1031_p9), %s1021_s5, %s693_s17 }
  0x6a   : > { %519 = vst [vmem:[%s487_s18] sm:$0xff] (%p1031_p9), %v518_v51 }
  0x6b   : > { %v520_v52 = vld [vmem:[%s361_s28 + $0x8] sm:$0xff] (%p1031_p9) }
  0x6c   : > { %521 = vst [vmem:[%s487_s18 + $0x10] sm:$0xff] %v520_v52 }
  0x6d PF: > { %s17_s24 = sadd.s32 1, %s836_s24   ;;  %s1032_s18 = smov %s816_s19 }
  0x6e   : > { %p14_p10 = scmp.ge.s32.totalorder %s17_s24, 10   ;;  %s1033_s19 = smov %s944_s14 }
  0x6f   : > { %s1034_s20 = smov %s828_s22  ;;  %s1035_s21 = smov %s832_s23 }
  0x70   : > { %s1036_s22 = smov %s1039_s26  ;;  %s1037_s23 = smov %s1043_s27 }
  0x71   :  { %16 = sbr.rel (!%p14_p10) target bundleno = 6 (0x6), region = 252 }
  0x76   :  { %544 = vsyncpa [#allocation3], 1 }
  0x77   :  { %546 = vsyncpa [#allocation3 + $0x1], 1 }

</bundles_post_ra>
